<compile_context>
chip_gen: v6e
topology: v6e:2x2x1
jax: 0.10.0
libtpu: 0.0.40
codegen_flags: <defaults>
</compile_context>

<pallas_src>
import math

import jax
import jax.numpy as jnp
import numpy as np
from jax.experimental import pallas as pl
from jax.experimental.pallas import tpu as pltpu

_LDA_X_COEF = -0.75 * (3.0 / math.pi) ** (1.0 / 3.0)


def _lda_x_kernel(rho_ref, out_ref):
    # Load in native dtype, compute in f32, cast back on store: the kernel's
    # HBM traffic stays at the native dtype width.
    x = rho_ref[...].astype(jnp.float32)
    # rho ** (1/3) via exp(log(x)/3): matches torch pow semantics
    # (0 -> 0, negative -> NaN).  Two EUP transcendentals/element, free
    # relative to the HBM roofline for this streaming kernel.
    cbrt = jnp.exp(jnp.log(x) * (1.0 / 3.0))
    out_ref[...] = (_LDA_X_COEF * cbrt).astype(out_ref.dtype)


def _ceil_div(a, b):
    return -(-a // b)


def _sublane_multiple(dtype):
    # f32 -> 8, bf16/f16 -> 16, 8-bit -> 32 (sub-32-bit packs along sublanes).
    return 8 * max(1, 4 // jnp.dtype(dtype).itemsize)


def _pick_block_rows(rows, sub, *, max_block_rows=512, min_steps=8):
    """Row block: multiple of `sub`, <= max_block_rows, aims for >= min_steps
    grid steps (pipelining) and best-effort even step count (v7x 2-TC split)."""
    if rows <= sub:
        return rows  # single block == full row extent (tiny input)
    br = (rows // min_steps) // sub * sub
    br = max(sub, min(br, max_block_rows))
    steps = _ceil_div(rows, br)
    if steps > 1 and steps % 2 == 1:
        cand = _ceil_div(_ceil_div(rows, steps + 1), sub) * sub
        if sub <= cand <= max_block_rows and _ceil_div(rows, cand) % 2 == 0:
            br = cand
    return br


def lda_x_forward(rho, *, max_block_rows=512):
    """Pallas implementation of LDA_X.forward for arbitrary-shaped rho.

    Note: do not raise max_block_rows to 8192-class values; v7x has only
    64 MiB physical VMEM and this kernel double-buffers in + out.
    """
    orig_shape = rho.shape
    dtype = rho.dtype
    n = int(rho.size)
    if n == 0:
        return rho

    sub = _sublane_multiple(dtype)
    itemsize = jnp.dtype(dtype).itemsize
    flat = rho.reshape(-1)  # contiguous row-major: free reshape, no copy

    compiler_params = pltpu.CompilerParams(
        dimension_semantics=("parallel",),
        vmem_limit_bytes=32 * 1024 * 1024,
    )
    cost = pl.CostEstimate(
        flops=2 * n,               # *(1/3) and *coef per element
        transcendentals=2 * n,     # log + exp per element
        bytes_accessed=2 * n * itemsize,
    )

    # Lane-dense 2-D path when n is a multiple of 128: free reshape, no pad,
    # no output slice, unmasked 128-lane stores.
    cols = next((c for c in (1024, 512, 256, 128) if n % c == 0), 0)
    if cols:
        rows = n // cols
        block_rows = _pick_block_rows(rows, sub, max_block_rows=max_block_rows)
        grid = (pl.cdiv(rows, block_rows),)
        x2d = flat.reshape(rows, cols)
        out2d = pl.pallas_call(
            _lda_x_kernel,
            out_shape=jax.ShapeDtypeStruct((rows, cols), dtype),
            grid=grid,
            in_specs=[pl.BlockSpec((block_rows, cols), lambda i: (i, 0))],
            out_specs=pl.BlockSpec((block_rows, cols), lambda i: (i, 0)),
            compiler_params=compiler_params,
            cost_estimate=cost,
        )(x2d)
        return out2d.reshape(orig_shape)

    # Ragged path (n not a multiple of 128): stay 1-D.  The grid's final
    # partial block is padded on read and its out-of-bounds lanes are
    # discarded on write-back by Pallas, so no wrapper-side jnp.pad or
    # output slice (each a whole-array HBM pass) is needed.
    block_n = max_block_rows * 512  # ~1 MiB of f32 per block
    if n <= block_n:
        block_n = n                 # single block == full extent
    else:
        block_n = (block_n // 4096) * 4096  # lane/sublane aligned for any dtype
    grid = (pl.cdiv(n, block_n),)
    out = pl.pallas_call(
        _lda_x_kernel,
        out_shape=jax.ShapeDtypeStruct((n,), dtype),
        grid=grid,
        in_specs=[pl.BlockSpec((block_n,), lambda i: (i,))],
        out_specs=pl.BlockSpec((block_n,), lambda i: (i,)),
        compiler_params=compiler_params,
        cost_estimate=cost,
    )(flat)
    return out.reshape(orig_shape)


def lda_x_reference(rho):
    """Pure-JAX reference matching the PyTorch module."""
    return (-3.0 / 4.0) * (3.0 / math.pi) ** (1.0 / 3.0) * rho ** (1.0 / 3.0)


if __name__ == "__main__":
    key = jax.random.PRNGKey(0)
    k1, k2, k3 = jax.random.split(key, 3)

    # (1) Small 4-D density block, f32: aligned 2-D path (2048 elems -> 2x1024).
    rho = jax.random.uniform(k1, (2, 4, 16, 16), jnp.float32,
                             minval=1e-6, maxval=5.0)
    out = jax.block_until_ready(lda_x_forward(rho))
    ref = lda_x_reference(rho)
    assert out.shape == rho.shape and out.dtype == rho.dtype
    assert np.allclose(np.asarray(out), np.asarray(ref), rtol=1e-4, atol=1e-6)

    # (2) Ragged 1-D grid-point vector (not a multiple of 128): 1-D path,
    #     no wrapper pad and no output slice.
    rho2 = jax.random.uniform(k2, (1237,), jnp.float32, minval=0.0, maxval=3.0)
    out2 = jax.block_until_ready(lda_x_forward(rho2))
    ref2 = lda_x_reference(rho2)
    assert out2.shape == rho2.shape and out2.dtype == rho2.dtype
    assert np.allclose(np.asarray(out2), np.asarray(ref2), rtol=1e-4, atol=1e-6)

    # (3) bf16 stays bf16 end-to-end (no wrapper casts); 16-row sublane blocks.
    rho3 = jax.random.uniform(k3, (4, 128, 128), jnp.float32,
                              minval=1e-3, maxval=5.0).astype(jnp.bfloat16)
    out3 = jax.block_until_ready(lda_x_forward(rho3))
    assert out3.shape == rho3.shape and out3.dtype == jnp.bfloat16
    ref3 = lda_x_reference(rho3.astype(jnp.float32))
    assert np.allclose(np.asarray(out3.astype(jnp.float32)), np.asarray(ref3),
                       rtol=2e-2, atol=2e-2)

    print("KERNEL_OK")
</pallas_src>

<mosaic_0001>
module attributes {stable_mosaic.version = 11 : i64} {
  func.func @_lda_x_kernel(%arg0: i32, %arg1: memref<2x1024xf32, #tpu.memory_space<vmem>>, %arg2: memref<2x1024xf32, #tpu.memory_space<vmem>>) attributes {dimension_semantics = [#tpu.dimension_semantics<parallel>], iteration_bounds = array<i64: 1>, scalar_prefetch = 0 : i64, scratch_operands = 0 : i64, tpu.core_type = #tpu.core_type<tc>, window_params = [{transform_indices = @transform_0, window_bounds = array<i64: 2, 1024>}, {transform_indices = @transform_1, window_bounds = array<i64: 2, 1024>}]} {
    %c0 = arith.constant 0 : index
    %c0_0 = arith.constant 0 : index
    %0 = vector.load %arg1[%c0, %c0_0] : memref<2x1024xf32, #tpu.memory_space<vmem>>, vector<2x1024xf32>
    %1 = math.log %0 : vector<2x1024xf32>
    %cst = arith.constant 0.333333343 : f32
    %2 = vector.broadcast %cst : f32 to vector<2x1024xf32>
    %3 = arith.mulf %1, %2 : vector<2x1024xf32>
    %4 = math.exp %3 : vector<2x1024xf32>
    %cst_1 = arith.constant -0.738558769 : f32
    %5 = vector.broadcast %cst_1 : f32 to vector<2x1024xf32>
    %6 = arith.mulf %5, %4 : vector<2x1024xf32>
    %c0_2 = arith.constant 0 : index
    %c0_3 = arith.constant 0 : index
    %7 = vector.load %arg2[%c0_2, %c0_3] : memref<2x1024xf32, #tpu.memory_space<vmem>>, vector<2x1024xf32>
    tpu.vector_store %arg2[%c0_2, %c0_3], %6 {strides = array<i32>} : memref<2x1024xf32, #tpu.memory_space<vmem>>, vector<2x1024xf32>,
    return
  }
  func.func @transform_0(%arg0: i32) -> (i32, i32) {
    %c0_i32 = arith.constant 0 : i32
    %c0_i32_0 = arith.constant 0 : i32
    return %arg0, %c0_i32 : i32, i32
  }
  func.func @transform_1(%arg0: i32) -> (i32, i32) {
    %c0_i32 = arith.constant 0 : i32
    %c0_i32_0 = arith.constant 0 : i32
    return %arg0, %c0_i32 : i32, i32
  }
}

</mosaic_0001>

<bundles_post_ra>
// kernel: tpu_custom_call.1
= control target key start
LH: loop header
LB: loop body
LE: loop exit
PB: predicated region body
PF: predicated region fallthrough
CT: control target
= control target key end

     0   :  { %6 = vsyncpa [#allocation3], 0  ;;  %s124_s0 = inlined_call_operand.hbm [shape: f32[2,1024], index: 0, kind: input, shape index: {}]   ;;  %s125_s1 = inlined_call_operand.hbm [shape: f32[2,1024], index: 1, kind: output, shape index: {}]  }
   0x1   :  { %7 = vsyncpa [#allocation4], 0  ;;  %s106_s6 = smov [#allocation2]  }
   0x2   :  { %s14_s7 = sshll.u32 %s106_s6, 4  ;;  %s15_s7 = int_to_ptr.vmem [resolvable:$true] %s14_s7 }
   0x3   :  { %s70_s8 = scalar_lea.vmem %s15_s7, 256  ;;  %p75_p1 = scmp.lt.s32.totalorder %s15_s7, %s15_s7 }
   0x4   :  { %p71_p0 = scmp.ne.s32.totalorder %s15_s7, %s70_s8  ;;  %p76_p2 = scmp.lt.s32.totalorder %s70_s8, %s70_s8 }
   0x6   :  { %p77_p3 = por %p76_p2, %p75_p1 }
   0x8   :  { %p78_p4 = pnand %p77_p3, %p71_p0 }
   0xa   :  { %81 = shalt.err (!%p78_p4)
}
   0xb   :  { %17 = dma.hbm_to_vmem [thread:$0]  %s124_s0, 256, %s15_s7, [#allocation3]  }
   0xc   :  { %102 = dma.done.wait [#allocation3], 256  }
   0xd   :  { %103 = vsyncadd [#allocation3], 4294967040  ;;  %v21_v0 = vld [vmem:[#allocation2] sm:$0xff]  ;;  %v22_v1 = vld [vmem:[#allocation2 + $0x8] sm:$0xff]  ;;  %s107_s11 = smov [#allocation5]  }
   0xe   :  { %54 = vlog2.f32 %v21_v0  ;;  %s43_s12 = sshll.u32 %s107_s11, 4  ;;  %s44_s12 = int_to_ptr.vmem [resolvable:$true] %s43_s12 }
   0xf   :  { %56 = vlog2.f32 %v22_v1  ;;  %s82_s0 = scalar_lea.vmem %s44_s12, 256  ;;  %p87_p6 = scmp.lt.s32.totalorder %s44_s12, %s44_s12 }
  0x10   :  { %p83_p5 = scmp.ne.s32.totalorder %s44_s12, %s82_s0  ;;  %p88_p7 = scmp.lt.s32.totalorder %s82_s0, %s82_s0 }
  0x12   :  { %p89_p8 = por %p88_p7, %p87_p6 }
  0x14   :  { %p90_p9 = pnand %p89_p8, %p83_p5 }
  0x1b   :  { %v55_v2 = vpop.eup %54 }
  0x1c   :  { %v57_v3 = vpop.eup %56  ;;  %v24_v4 = vmul.f32 0.6931472, %v55_v2 }
  0x1d   :  { %v26_v5 = vmul.f32 0.6931472, %v57_v3 }
  0x1e   :  { %v27_v6 = vmul.f32 0.33333334, %v24_v4 }
  0x1f   :  { %v28_v7 = vmul.f32 0.33333334, %v26_v5 }
  0x20   :  { %v29_v8 = vmul.f32 1.442695, %v27_v6 }
  0x21   :  { %v31_v9 = vmul.f32 1.442695, %v28_v7 }
  0x22   :  { %58 = vpow2.f32 %v29_v8 }
  0x23   :  { %60 = vpow2.f32 %v31_v9 }
  0x2f   :  { %v59_v10 = vpop.eup %58 }
  0x30   :  { %v61_v11 = vpop.eup %60  ;;  %v33_v12 = vmul.f32 -0.73855877, %v59_v10 }
  0x31   :  { %v34_v13 = vmul.f32 -0.73855877, %v61_v11 }
  0x32   :  { %35 = vst [vmem:[#allocation5] sm:$0xff] %v33_v12 }
  0x33   :  { %36 = vst [vmem:[#allocation5 + $0x8] sm:$0xff] %v34_v13 }
  0x34   :  { %93 = shalt.err (!%p90_p9)
}
  0x35   :  { %46 = dma.vmem_to_hbm [thread:$0]  %s44_s12, 256, %s125_s1, [#allocation4]  }
  0x36   :  { %104 = dma.done.wait [#allocation4], 256  }
  0x37   :  { %105 = vsyncadd [#allocation4], 4294967040 }
  0x38   :  { %50 = vsyncpa [#allocation3], 1 }
  0x39   :  { %51 = vsyncpa [#allocation4], 1 }

</bundles_post_ra>
